<compile_context>
chip_gen: v7x
topology: tpu7x:2x2x1
jax: 0.10.0
libtpu: 0.0.40
codegen_flags: <defaults>
</compile_context>

<pallas_src>
import functools

import jax
import jax.numpy as jnp
from jax import lax
from jax.experimental import pallas as pl
from jax.experimental.pallas import tpu as pltpu

LN_EPS = 1e-5  # PyTorch nn.LayerNorm default


def _round_up(v, mult):
    return ((v + mult - 1) // mult) * mult


def _basic_fc_kernel(x_ref, gamma_ref, beta_ref, w_ref, b_ref, o_ref):
    """Fused LayerNorm(c1) -> Linear(c1,c2) -> ReLU on one (TM, c1) row tile."""
    x = x_ref[...].astype(jnp.float32)                         # (TM, c1)

    # --- LayerNorm over the feature axis (biased variance, like PyTorch) ---
    mean = jnp.mean(x, axis=-1, keepdims=True)                 # (TM, 1)
    centered = x - mean
    var = jnp.mean(centered * centered, axis=-1, keepdims=True)
    xn = centered * lax.rsqrt(var + LN_EPS)                    # (TM, c1)
    xn = xn * gamma_ref[...].astype(jnp.float32) + beta_ref[...].astype(jnp.float32)

    # --- Linear on the MXU: bf16 operands, f32 accumulation ---
    y = jnp.dot(xn.astype(w_ref.dtype), w_ref[...],
                preferred_element_type=jnp.float32)            # (TM, c2p)
    y = y + b_ref[...].astype(jnp.float32)

    # --- ReLU (Dropout p=0.0 is identity) ---
    o_ref[...] = jnp.maximum(y, 0.0).astype(o_ref.dtype)


def basic_fc_layer(x, gamma, beta, w_t, b, *, block_m=512, mxu_dtype=jnp.bfloat16):
    """Fused BasicFCLayer forward.

    x:      (..., c1) float32
    gamma:  (c1,)   LayerNorm weight
    beta:   (c1,)   LayerNorm bias
    w_t:    (c1, c2)  Linear weight, pre-transposed (PyTorch stores (c2, c1))
    b:      (c2,)   Linear bias
    """
    orig_shape = x.shape
    c1 = orig_shape[-1]
    c2 = w_t.shape[1]
    m = 1
    for d in orig_shape[:-1]:
        m *= d
    x2d = x.reshape(m, c1)

    # --- lane-dense output: pad c2 up to a multiple of 128 (sliced off below) ---
    c2p = _round_up(c2, 128)
    if c2p != c2:
        w_t = jnp.pad(w_t, ((0, 0), (0, c2p - c2)))
        b = jnp.pad(b, (0, c2p - c2))

    # --- tile the row dimension; pad m to a multiple of TM (and of 8) ---
    tm = min(block_m, _round_up(m, 8))
    mp = _round_up(m, tm)
    if mp != m:
        # zero rows are harmless: var+eps > 0, results are sliced away.
        x2d = jnp.pad(x2d, ((0, mp - m), (0, 0)))
    grid_m = pl.cdiv(mp, tm)

    # MXU operands in bf16 (weights live in HBM as bf16 -> half the weight DMA).
    w_mxu = w_t.astype(mxu_dtype)
    gamma2d = gamma.reshape(1, c1)
    beta2d = beta.reshape(1, c1)
    b2d = b.reshape(1, c2p).astype(jnp.float32)

    # --- VMEM budget: double-buffered x/out tiles + resident weight + headroom ---
    itm = jnp.dtype(x.dtype).itemsize
    x_tile_b = tm * c1 * itm
    o_tile_b = tm * c2p * itm
    w_b = c1 * c2p * jnp.dtype(mxu_dtype).itemsize
    small_b = (2 * c1 + c2p) * 4
    f32_tmp_b = 4 * tm * max(c1, c2p)                  # in-kernel f32 temporaries
    vmem_need = 2 * (x_tile_b + o_tile_b) + 2 * (w_b + small_b) + 2 * f32_tmp_b
    vmem_limit = min(max(int(1.5 * vmem_need), 16 << 20), 64 << 20)  # v7x-safe cap

    cost = pl.CostEstimate(
        flops=2 * mp * c1 * c2p + 8 * mp * c1,
        bytes_accessed=mp * c1 * itm + mp * c2p * itm + w_b + small_b,
        transcendentals=mp,
    )

    out = pl.pallas_call(
        _basic_fc_kernel,
        out_shape=jax.ShapeDtypeStruct((mp, c2p), x.dtype),
        grid_spec=pltpu.PrefetchScalarGridSpec(
            num_scalar_prefetch=0,
            grid=(grid_m,),
            in_specs=[
                pl.BlockSpec((tm, c1), lambda i: (i, 0)),    # x: tiled over rows
                pl.BlockSpec((1, c1), lambda i: (0, 0)),     # gamma: resident
                pl.BlockSpec((1, c1), lambda i: (0, 0)),     # beta: resident
                pl.BlockSpec((c1, c2p), lambda i: (0, 0)),   # W (bf16): resident
                pl.BlockSpec((1, c2p), lambda i: (0, 0)),    # bias: resident
            ],
            out_specs=pl.BlockSpec((tm, c2p), lambda i: (i, 0)),
        ),
        compiler_params=pltpu.CompilerParams(
            dimension_semantics=("parallel",),
            vmem_limit_bytes=vmem_limit,
        ),
        cost_estimate=cost,
    )(x2d, gamma2d, beta2d, w_mxu, b2d)

    return out[:m, :c2].reshape(*orig_shape[:-1], c2)


def init_params(key, c1, c2):
    """Deterministic init mimicking PyTorch defaults (kaiming-uniform Linear, LN ones/zeros)."""
    k_w, k_b = jax.random.split(key)
    bound = 1.0 / jnp.sqrt(c1)
    # PyTorch Linear weight is (c2, c1); we store its transpose (c1, c2) for xn @ W.
    w_t = jax.random.uniform(k_w, (c1, c2), jnp.float32, -bound, bound)
    b = jax.random.uniform(k_b, (c2,), jnp.float32, -bound, bound)
    gamma = jnp.ones((c1,), jnp.float32)
    beta = jnp.zeros((c1,), jnp.float32)
    return gamma, beta, w_t, b


def reference_bf16(x, gamma, beta, w_t, b):
    """Same math as the kernel (f32 LN, bf16 MXU operands, f32 accumulation)."""
    mean = jnp.mean(x, axis=-1, keepdims=True)
    centered = x - mean
    var = jnp.mean(centered * centered, axis=-1, keepdims=True)
    xn = centered * lax.rsqrt(var + LN_EPS) * gamma + beta
    y = jnp.dot(xn.astype(jnp.bfloat16), w_t.astype(jnp.bfloat16),
                preferred_element_type=jnp.float32) + b
    return jnp.maximum(y, 0.0)


def reference_f32(x, gamma, beta, w_t, b):
    mean = jnp.mean(x, axis=-1, keepdims=True)
    var = jnp.mean((x - mean) ** 2, axis=-1, keepdims=True)
    xn = (x - mean) / jnp.sqrt(var + LN_EPS) * gamma + beta
    return jnp.maximum(xn @ w_t + b, 0.0)


if __name__ == "__main__":
    B, S, C1, C2 = 2, 8, 32, 32
    key = jax.random.PRNGKey(0)
    k_x, k_p = jax.random.split(key)
    x = jax.random.normal(k_x, (B, S, C1), jnp.float32)
    gamma, beta, w_t, b = init_params(k_p, C1, C2)

    out = basic_fc_layer(x, gamma, beta, w_t, b)
    out = jax.block_until_ready(out)
    assert out.shape == (B, S, C2), out.shape

    # Parity vs. a bf16-matmul-aware reference (same numerics as the kernel).
    ref_bf16 = reference_bf16(x, gamma, beta, w_t, b)
    err_bf16 = float(jnp.max(jnp.abs(out - ref_bf16)))
    assert jnp.allclose(out, ref_bf16, atol=2e-2, rtol=2e-2), err_bf16

    # Sanity vs. the pure-f32 PyTorch-equivalent reference (looser: bf16 MXU feed).
    ref_f32 = reference_f32(x, gamma, beta, w_t, b)
    err_f32 = float(jnp.max(jnp.abs(out - ref_f32)))
    assert jnp.allclose(out, ref_f32, atol=1e-1, rtol=1e-1), err_f32

    print("KERNEL_OK")
</pallas_src>

<mosaic_0001>
module attributes {stable_mosaic.version = 11 : i64} {
  func.func @_basic_fc_kernel(%arg0: i32, %arg1: memref<16x32xf32, #tpu.memory_space<vmem>>, %arg2: memref<1x32xf32, #tpu.memory_space<vmem>>, %arg3: memref<1x32xf32, #tpu.memory_space<vmem>>, %arg4: memref<32x128xbf16, #tpu.memory_space<vmem>>, %arg5: memref<1x128xf32, #tpu.memory_space<vmem>>, %arg6: memref<16x128xf32, #tpu.memory_space<vmem>>) attributes {dimension_semantics = [#tpu.dimension_semantics<parallel>], iteration_bounds = array<i64: 1>, scalar_prefetch = 0 : i64, scratch_operands = 0 : i64, tpu.core_type = #tpu.core_type<tc>, window_params = [{transform_indices = @transform_0, window_bounds = array<i64: 16, 32>}, {pipeline_mode = #tpu.pipeline_mode<synchronous>, transform_indices = @transform_1, window_bounds = array<i64: 1, 32>}, {pipeline_mode = #tpu.pipeline_mode<synchronous>, transform_indices = @transform_2, window_bounds = array<i64: 1, 32>}, {pipeline_mode = #tpu.pipeline_mode<synchronous>, transform_indices = @transform_3, window_bounds = array<i64: 32, 128>}, {pipeline_mode = #tpu.pipeline_mode<synchronous>, transform_indices = @transform_4, window_bounds = array<i64: 1, 128>}, {transform_indices = @transform_5, window_bounds = array<i64: 16, 128>}]} {
    %c0 = arith.constant 0 : index
    %c0_0 = arith.constant 0 : index
    %0 = vector.load %arg1[%c0, %c0_0] : memref<16x32xf32, #tpu.memory_space<vmem>>, vector<16x32xf32>
    %cst = arith.constant dense<0.000000e+00> : vector<16xf32>
    %1 = vector.multi_reduction <add>, %0, %cst [1] : vector<16x32xf32> to vector<16xf32>
    %2 = vector.shape_cast %1 : vector<16xf32> to vector<16x1xf32>
    %cst_1 = arith.constant 3.200000e+01 : f32
    %3 = vector.broadcast %cst_1 : f32 to vector<16x1xf32>
    %4 = arith.divf %2, %3 : vector<16x1xf32>
    %5 = vector.broadcast %4 : vector<16x1xf32> to vector<16x32xf32>
    %6 = arith.subf %0, %5 : vector<16x32xf32>
    %7 = arith.mulf %6, %6 : vector<16x32xf32>
    %cst_2 = arith.constant dense<0.000000e+00> : vector<16xf32>
    %8 = vector.multi_reduction <add>, %7, %cst_2 [1] : vector<16x32xf32> to vector<16xf32>
    %9 = vector.shape_cast %8 : vector<16xf32> to vector<16x1xf32>
    %cst_3 = arith.constant 3.200000e+01 : f32
    %10 = vector.broadcast %cst_3 : f32 to vector<16x1xf32>
    %11 = arith.divf %9, %10 : vector<16x1xf32>
    %cst_4 = arith.constant 9.99999974E-6 : f32
    %12 = vector.broadcast %cst_4 : f32 to vector<16x1xf32>
    %13 = arith.addf %11, %12 : vector<16x1xf32>
    %14 = math.rsqrt %13 : vector<16x1xf32>
    %15 = vector.broadcast %14 : vector<16x1xf32> to vector<16x32xf32>
    %16 = arith.mulf %6, %15 : vector<16x32xf32>
    %c0_5 = arith.constant 0 : index
    %c0_6 = arith.constant 0 : index
    %17 = vector.load %arg2[%c0_5, %c0_6] : memref<1x32xf32, #tpu.memory_space<vmem>>, vector<1x32xf32>
    %18 = vector.broadcast %17 : vector<1x32xf32> to vector<16x32xf32>
    %19 = arith.mulf %16, %18 : vector<16x32xf32>
    %c0_7 = arith.constant 0 : index
    %c0_8 = arith.constant 0 : index
    %20 = vector.load %arg3[%c0_7, %c0_8] : memref<1x32xf32, #tpu.memory_space<vmem>>, vector<1x32xf32>
    %21 = vector.broadcast %20 : vector<1x32xf32> to vector<16x32xf32>
    %22 = arith.addf %19, %21 : vector<16x32xf32>
    %23 = arith.truncf %22 : vector<16x32xf32> to vector<16x32xbf16>
    %c0_9 = arith.constant 0 : index
    %c0_10 = arith.constant 0 : index
    %24 = vector.load %arg4[%c0_9, %c0_10] : memref<32x128xbf16, #tpu.memory_space<vmem>>, vector<32x128xbf16>
    %cst_11 = arith.constant dense<0.000000e+00> : vector<16x128xf32>
    %25 = tpu.matmul %23, %24, %cst_11 {dimension_numbers = #tpu.dot_dimension_numbers<[1], [0], [0], [1], [0, 0, 1, 1], [], []>} : vector<16x32xbf16>, vector<32x128xbf16>, vector<16x128xf32> -> vector<16x128xf32>
    %c0_12 = arith.constant 0 : index
    %c0_13 = arith.constant 0 : index
    %26 = vector.load %arg5[%c0_12, %c0_13] : memref<1x128xf32, #tpu.memory_space<vmem>>, vector<1x128xf32>
    %27 = vector.broadcast %26 : vector<1x128xf32> to vector<16x128xf32>
    %28 = arith.addf %25, %27 : vector<16x128xf32>
    %cst_14 = arith.constant 0.000000e+00 : f32
    %29 = vector.broadcast %cst_14 : f32 to vector<16x128xf32>
    %30 = arith.maximumf %28, %29 : vector<16x128xf32>
    %c0_15 = arith.constant 0 : index
    %c0_16 = arith.constant 0 : index
    %31 = vector.load %arg6[%c0_15, %c0_16] : memref<16x128xf32, #tpu.memory_space<vmem>>, vector<16x128xf32>
    tpu.vector_store %arg6[%c0_15, %c0_16], %30 {strides = array<i32>} : memref<16x128xf32, #tpu.memory_space<vmem>>, vector<16x128xf32>,
    return
  }
  func.func @transform_0(%arg0: i32) -> (i32, i32) {
    %c0_i32 = arith.constant 0 : i32
    %c0_i32_0 = arith.constant 0 : i32
    return %arg0, %c0_i32 : i32, i32
  }
  func.func @transform_1(%arg0: i32) -> (i32, i32) {
    %c0_i32 = arith.constant 0 : i32
    %c0_i32_0 = arith.constant 0 : i32
    %c0_i32_1 = arith.constant 0 : i32
    return %c0_i32, %c0_i32_0 : i32, i32
  }
  func.func @transform_2(%arg0: i32) -> (i32, i32) {
    %c0_i32 = arith.constant 0 : i32
    %c0_i32_0 = arith.constant 0 : i32
    %c0_i32_1 = arith.constant 0 : i32
    return %c0_i32, %c0_i32_0 : i32, i32
  }
  func.func @transform_3(%arg0: i32) -> (i32, i32) {
    %c0_i32 = arith.constant 0 : i32
    %c0_i32_0 = arith.constant 0 : i32
    %c0_i32_1 = arith.constant 0 : i32
    return %c0_i32, %c0_i32_0 : i32, i32
  }
  func.func @transform_4(%arg0: i32) -> (i32, i32) {
    %c0_i32 = arith.constant 0 : i32
    %c0_i32_0 = arith.constant 0 : i32
    %c0_i32_1 = arith.constant 0 : i32
    return %c0_i32, %c0_i32_0 : i32, i32
  }
  func.func @transform_5(%arg0: i32) -> (i32, i32) {
    %c0_i32 = arith.constant 0 : i32
    %c0_i32_0 = arith.constant 0 : i32
    return %arg0, %c0_i32 : i32, i32
  }
}

</mosaic_0001>

<bundles_post_ra>
// kernel: tpu_custom_call.1
= control target key start
LH: loop header
LB: loop body
LE: loop exit
PB: predicated region body
PF: predicated region fallthrough
CT: control target
= control target key end

     0   :  { %10 = vsyncpa [#allocation3], 0  ;;  %s387_s0 = inlined_call_operand.hbm [shape: f32[16,32], index: 0, kind: input, shape index: {}]   ;;  %s388_s1 = inlined_call_operand.vmem [shape: f32[1,32], index: 1, kind: input, shape index: {}]   ;;  %s389_s2 = inlined_call_operand.vmem [shape: f32[1,32], index: 2, kind: input, shape index: {}]   ;;  %s390_s3 = inlined_call_operand.hbm [shape: bf16[32,128], index: 3, kind: input, shape index: {}]   ;;  %s391_s4 = inlined_call_operand.vmem [shape: f32[1,128], index: 4, kind: input, shape index: {}]   ;;  %s392_s5 = inlined_call_operand.hbm [shape: f32[16,128], index: 5, kind: output, shape index: {}]  }
   0x1   :  { %11 = vsyncpa [#allocation6], 0 }
   0x2   :  { %12 = vsyncpa [#allocation4], 0  ;;  %s292_s18 = smov [#allocation2]   ;;  %s220_s22 = scalar_lea.hbm %s387_s0, 256 }
   0x3   :  { %s18_s19 = sshll.u32 %s292_s18, 4  ;;  %p221_p0 = scmp.ne.s32.totalorder %s387_s0, %s220_s22  ;;  %s19_s19 = int_to_ptr.vmem [resolvable:$true] %s18_s19 }
   0x4   :  { %p224_p1 = scmp.lt.u32.totalorder %s220_s22, %s387_s0 }
   0x6   :  { %p226_p2 = pnand %p224_p1, %p221_p0 }
   0x8   :  { %229 = shalt.err (!%p226_p2)
}
   0x9   :  { %s230_s27 = scalar_lea.vmem %s19_s19, 256  ;;  %p235_p4 = scmp.lt.s32.totalorder %s19_s19, %s19_s19 }
   0xa   :  { %p231_p3 = scmp.ne.s32.totalorder %s19_s19, %s230_s27  ;;  %p236_p5 = scmp.lt.s32.totalorder %s230_s27, %s230_s27 }
   0xc   :  { %p237_p6 = por %p236_p5, %p235_p4 }
   0xe   :  { %p238_p7 = pnand %p237_p6, %p231_p3 }
  0x10   :  { %241 = shalt.err (!%p238_p7)
}
  0x11   :  { %s293_s28 = smov 128   ;;  %s294_s29 = smov 8  }
  0x12   :  { %24 = dma.hbm_to_vmem [thread:$0]  %s387_s0, 256, %s19_s19, [#allocation3], %s293_s28, %s293_s28, %s294_s29  }
  0x13   :  { %s295_s7 = smov [#allocation5]   ;;  %s242_s11 = scalar_lea.hbm %s390_s3, 256 }
  0x14   :  { %s34_s8 = sshll.u32 %s295_s7, 4  ;;  %p243_p8 = scmp.ne.s32.totalorder %s390_s3, %s242_s11  ;;  %s35_s8 = int_to_ptr.vmem [resolvable:$true] %s34_s8 }
  0x15   :  { %p246_p9 = scmp.lt.u32.totalorder %s242_s11, %s390_s3 }
  0x17   :  { %p248_p10 = pnand %p246_p9, %p243_p8 }
  0x19   :  { %251 = shalt.err (!%p248_p10)
}
  0x1a   :  { %s252_s16 = scalar_lea.vmem %s35_s8, 256  ;;  %p257_p12 = scmp.lt.s32.totalorder %s35_s8, %s35_s8 }
  0x1b   :  { %p253_p11 = scmp.ne.s32.totalorder %s35_s8, %s252_s16  ;;  %p258_p13 = scmp.lt.s32.totalorder %s252_s16, %s252_s16 }
  0x1d   :  { %p259_p0 = por %p258_p13, %p257_p12 }
  0x1f   :  { %p260_p1 = pnand %p259_p0, %p253_p11 }
  0x21   :  { %263 = shalt.err (!%p260_p1)
}
  0x22   :  { %s296_s0 = smov 64   ;;  %s297_s17 = smov 4  }
  0x23   :  { %40 = dma.hbm_to_vmem [thread:$0]  %s390_s3, 256, %s35_s8, [#allocation6], %s296_s0, %s296_s0, %s297_s17  }
  0x24   :  { %286 = dma.done.wait [#allocation3], 256  }
  0x25   :  { %287 = vsyncadd [#allocation3], 4294967040 }
  0x26   :  { %288 = dma.done.wait [#allocation6], 256  }
  0x27   :  { %289 = vsyncadd [#allocation6], 4294967040  ;;  %vm52_vm0 = vcmask 261120   ;;  %v50_v0 = vld [vmem:[#allocation2] sm:$0xff]  ;;  %v51_v1 = vld [vmem:[#allocation2 + $0x8] sm:$0xff]  ;;  %v298_v15 = vmov 0.0  }
  0x28   :  { %v53_v2 = vsel %vm52_vm0, %v50_v0, 0.0  ;;  %v56_v3 = vsel %vm52_vm0, %v51_v1, 0.0  ;;  %v214_v14 = vld [vmem:[#allocation5] sm:$0xff]   ;;  %197 = vmatprep.subr.bf16.mxu0 %v298_v15  ;;  %v215_v16 = vld [vmem:[#allocation5 + $0x8] sm:$0xff]   ;;  %vm299_vm1 = vmmov 0  }
  0x29   :  { %54 = vadd.xlane.f32.xlu0 %v53_v2  ;;  %198 = vmatpush3.bf16.msra.mxu0 %v214_v14  ;;  %v188_v25 = vld [vmem:[%s388_s1] ss:$0 sm:$0xff]  ;;  %s300_s1 = smov [#allocation7]  }
  0x2a   :  { %201 = vmatprep.mubr.msk.bf16.mxu0 %vm299_vm1, %v298_v15  ;;  %199 = vmatprep.subr.bf16.mxu0 %v298_v15  ;;  %v189_v29 = vld [vmem:[%s389_s2] ss:$0 sm:$0xff]  ;;  %s175_s25 = sshll.u32 %s300_s1, 4  ;;  %s176_s25 = int_to_ptr.vmem [resolvable:$true] %s175_s25 }
  0x2b   :  { %v190_v34 = vld [vmem:[%s391_s4] ss:$0 sm:$0xff]  ;;  %s264_s2 = scalar_lea.vmem %s176_s25, 256  ;;  %p269_p3 = scmp.lt.s32.totalorder %s176_s25, %s176_s25 }
  0x2c   :  { %p265_p2 = scmp.ne.s32.totalorder %s176_s25, %s264_s2  ;;  %p270_p4 = scmp.lt.s32.totalorder %s264_s2, %s264_s2 }
  0x2d   :  { %57 = vadd.xlane.f32.xlu0 %v56_v3  ;;  %200 = vmatpush3.bf16.msra.mxu0 %v215_v16 }
  0x2e   :  { %p271_p5 = por %p270_p4, %p269_p3 }
  0x30   :  { %p272_p6 = pnand %p271_p5, %p265_p2 }
  0xb6   :  { %v55_v4 = vpop.xlane.xlu0 %54 }
  0xb7   :  { %v60_v5 = vmul.f32 0.03125, %v55_v4 }
  0xb9   :  { %v62_v6 = vsub.f32 %v50_v0, %v60_v5 }
  0xba   :  { %v58_v7 = vpop.xlane.xlu0 %57 }
  0xbb   :  { %v61_v8 = vmul.f32 0.03125, %v58_v7  ;;  %v64_v9 = vmul.f32 %v62_v6, %v62_v6 }
  0xbd   :  { %v63_v10 = vsub.f32 %v51_v1, %v61_v8  ;;  %v66_v11 = vsel %vm52_vm0, %v64_v9, 0.0 }
  0xbe   :  { %67 = vadd.xlane.f32.xlu1 %v66_v11 }
  0xbf   :  { %v65_v12 = vmul.f32 %v63_v10, %v63_v10 }
  0xc1   :  { %v69_v13 = vsel %vm52_vm0, %v65_v12, 0.0 }
  0xc2   :  { %70 = vadd.xlane.f32.xlu1 %v69_v13 }
 0x14b   :  { %v68_v17 = vpop.xlane.xlu1 %67 }
 0x14c   :  { %v72_v18 = vmul.f32 0.03125, %v68_v17 }
 0x14e   :  { %v74_v19 = vadd.f32 1e-05, %v72_v18 }
 0x14f   :  { %v71_v20 = vpop.xlane.xlu1 %70 }
 0x150   :  { %216 = vrsqrt.f32 %v74_v19  ;;  %v73_v21 = vmul.f32 0.03125, %v71_v20 }
 0x152   :  { %v75_v22 = vadd.f32 1e-05, %v73_v21 }
 0x154   :  { %218 = vrsqrt.f32 %v75_v22 }
 0x15a   :  { %v217_v23 = vpop.eup %216 }
 0x15b   :  { %v78_v24 = vmul.f32 %v217_v23, %v62_v6 }
 0x15d   :  { %v87_v28 = vmul.f32 %v188_v25, %v78_v24 }
 0x15e   :  { %v219_v26 = vpop.eup %218 }
 0x15f   :  { %v79_v27 = vmul.f32 %v219_v26, %v63_v10  ;;  %v96_v31 = vadd.f32 %v189_v29, %v87_v28 }
 0x161   :  { %v88_v30 = vmul.f32 %v188_v25, %v79_v27 }
 0x163   :  { %v97_v32 = vadd.f32 %v189_v29, %v88_v30 }
 0x165   :  { %v98_v33 = vpack.c.bf16 %v97_v32, %v96_v31 }
 0x167   :  { %202 = vmatmul.mubr.msk.bf16.vlgmr.msra.gmra.mrb[0].mxu0 %vm52_vm0, %v98_v33 }
 0x23a   :  { %v159_v35 = vpop.f32.mrb[0].mxu0 }
 0x23b   :  { %v160_v36 = vadd.f32 %v190_v34, %v159_v35  ;;  %v203_v37 = vpop.f32.mrb[1].mxu0 }
 0x23c   :  { %v162_v38 = vpop.f32.mrb[2].mxu0 }
 0x23d   :  { %v166_v39 = vmax.f32 %v160_v36, 0.0  ;;  %v163_v40 = vadd.f32 %v190_v34, %v162_v38  ;;  %v204_v41 = vpop.f32.mrb[3].mxu0 }
 0x23f   :  { %168 = vst [vmem:[#allocation7] sm:$0xff] %v166_v39  ;;  %v167_v42 = vmax.f32 %v163_v40, 0.0 }
 0x241   :  { %169 = vst [vmem:[#allocation7 + $0x8] sm:$0xff] %v167_v42 }
 0x242   :  { %275 = shalt.err (!%p272_p6)
}
 0x243   :  { %s276_s27 = scalar_lea.hbm %s392_s5, 256 }
 0x244   :  { %p277_p7 = scmp.ne.s32.totalorder %s392_s5, %s276_s27  ;;  %p280_p8 = scmp.lt.u32.totalorder %s276_s27, %s392_s5 }
 0x246   :  { %p282_p9 = pnand %p280_p8, %p277_p7 }
 0x248   :  { %285 = shalt.err (!%p282_p9)
}
 0x249   :  { %181 = dma.vmem_to_hbm [thread:$0]  %s176_s25, 256, %s392_s5, [#allocation4], %s293_s28, %s293_s28, %s294_s29  }
 0x24a   :  { %290 = dma.done.wait [#allocation4], 256  }
 0x24b   :  { %291 = vsyncadd [#allocation4], 4294967040 }
 0x24c   :  { %185 = vsyncpa [#allocation3], 1 }
 0x24d   :  { %186 = vsyncpa [#allocation6], 1 }
 0x24e   :  { %187 = vsyncpa [#allocation4], 1 }

</bundles_post_ra>
